<compile_context>
chip_gen: v5e
topology: v5e:2x2
jax: 0.10.0
libtpu: 0.0.40
codegen_flags: <defaults>
</compile_context>

<pallas_src>
import functools

import jax
import jax.numpy as jnp
from jax.experimental import pallas as pl
from jax.experimental.pallas import tpu as pltpu


# ---------------------------------------------------------------------------
# Hardware / budget helpers
# ---------------------------------------------------------------------------
def _vmem_capacity_bytes():
    try:
        info = pltpu.get_tpu_info()
        cap = getattr(info, "vmem_capacity_bytes", None)
        if cap:
            return int(cap)
    except Exception:
        pass
    return 64 << 20  # conservative (v7x per-core VMEM); safe on all gens


def _choose_batch_pack(n, sample_bytes, block_bytes):
    """Pack nb samples per fused block (nb divides N), keep >= 2 grid steps."""
    nb_max = max(1, block_bytes // max(1, sample_bytes))
    if n >= 2:
        nb_max = min(nb_max, n // 2)   # >= 2 steps: megacore + DMA pipelining
    nb_max = max(1, min(nb_max, n))
    for d in range(nb_max, 0, -1):
        if n % d == 0:
            return d
    return 1


def _choose_stream_tile(hw, c, itemsize, tile_bytes):
    """Lane-dense HW tile (multiple of 128) within the byte budget, or None."""
    elems = (tile_bytes // max(1, c * itemsize)) // 128 * 128
    if elems < 128:
        return None
    return min(elems, pl.cdiv(hw, 128) * 128)


# ---------------------------------------------------------------------------
# In-kernel helpers
# ---------------------------------------------------------------------------
def _lane_sum_f32(x_ref3, length):
    """f32 sum over the last (lane) axis of a 3-D ref, chunked in 128-lane
    slices so no full-block f32 copy is ever materialized."""
    lead = tuple(x_ref3.shape[:-1])
    n_full = length // 128
    rem = length - n_full * 128
    total = jnp.zeros(lead, jnp.float32)
    if n_full > 0:
        def body(k, acc):
            off = pl.multiple_of(k * 128, 128)
            return acc + x_ref3[:, :, pl.ds(off, 128)].astype(jnp.float32)
        partial = jax.lax.fori_loop(
            0, n_full, body, jnp.zeros(lead + (128,), jnp.float32),
            unroll=True if n_full <= 8 else 8)
        total = total + jnp.sum(partial, axis=-1)
    if rem > 0:
        total = total + jnp.sum(
            x_ref3[:, :, n_full * 128:length].astype(jnp.float32), axis=-1)
    return total


# ---------------------------------------------------------------------------
# Kernels
# ---------------------------------------------------------------------------
def _se_fused_kernel(x_ref, wd_ref, bd_ref, wu_ref, bu_ref, o_ref, *, inv_hw):
    """One-shot path: block = (nb, C, HW) fully resident."""
    hw = x_ref.shape[-1]
    pooled = _lane_sum_f32(x_ref, hw) * inv_hw                     # (nb, C) f32
    h = jnp.maximum(
        jnp.dot(pooled, wd_ref[...], preferred_element_type=jnp.float32)
        + bd_ref[...], 0.0)                                        # (nb, C_int)
    scale = jax.nn.sigmoid(
        jnp.dot(h, wu_ref[...], preferred_element_type=jnp.float32)
        + bu_ref[...])                                             # (nb, C)
    x = x_ref[...]                                                 # native dtype
    o_ref[...] = (x * scale[:, :, None].astype(x.dtype)).astype(o_ref.dtype)


def _pool_kernel(x_ref, pooled_ref, acc_ref, *, hw, thw):
    """Pass 1: global average pool. Lane-partial f32 sums accumulate in a
    (C, 128) VMEM scratch across HW tiles; one cross-lane reduce at finalize.
    Ragged last tile is masked (thw is always a multiple of 128)."""
    hw_i = pl.program_id(1)

    @pl.when(hw_i == 0)
    def _init():
        acc_ref[...] = jnp.zeros_like(acc_ref)

    n_chunks = thw // 128
    ragged = (hw % thw) != 0
    base = hw_i * thw
    lane = jax.lax.broadcasted_iota(jnp.int32, (1, 128), 1)

    def body(k, acc):
        off = pl.multiple_of(k * 128, 128)
        chunk = x_ref[0, :, pl.ds(off, 128)].astype(jnp.float32)   # (C, 128)
        if ragged:
            chunk = jnp.where(base + off + lane < hw, chunk, 0.0)
        return acc + chunk

    acc_ref[...] = jax.lax.fori_loop(
        0, n_chunks, body, acc_ref[...],
        unroll=True if n_chunks <= 8 else 8)

    @pl.when(hw_i == pl.num_programs(1) - 1)
    def _finalize():
        pooled_ref[...] = (jnp.sum(acc_ref[...], axis=-1)
                           * (1.0 / hw))[None, None, :]            # (1, 1, C)


def _excite_kernel(p_ref, wd_ref, bd_ref, wu_ref, bu_ref, s_ref):
    """Excitation MLP batched over all N samples (tiny, fully resident)."""
    h = jnp.maximum(
        jnp.dot(p_ref[...], wd_ref[...], preferred_element_type=jnp.float32)
        + bd_ref[...], 0.0)
    s_ref[...] = jax.nn.sigmoid(
        jnp.dot(h, wu_ref[...], preferred_element_type=jnp.float32)
        + bu_ref[...])


def _scale_kernel(x_ref, s_ref, o_ref):
    """Pass 2: streaming per-channel scale, native-dtype multiply (bf16-native
    on v6e/v7x). OOB lanes of the ragged last tile are dropped on writeback."""
    o_ref[...] = x_ref[...] * s_ref[...].astype(o_ref.dtype)


# ---------------------------------------------------------------------------
# Wrapper
# ---------------------------------------------------------------------------
def se_block(x_nchw, w_down, b_down, w_up, b_up, *,
             fused_block_bytes=None, stream_block_bytes=None):
    """x_nchw: (N, C, H, W); w_down: (C_int, C); w_up: (C, C_int); biases 1-D.
    Output dtype matches the input dtype (PyTorch semantics)."""
    N, C, H, W = x_nchw.shape
    C_int = w_down.shape[0]
    HW = H * W
    dtype = x_nchw.dtype
    itemsize = x_nchw.dtype.itemsize

    vmem_cap = _vmem_capacity_bytes()
    if fused_block_bytes is None:
        fused_block_bytes = vmem_cap // 10          # ~6.4 MiB v7x / ~12.8 MiB v5e,v6e
    if stream_block_bytes is None:
        stream_block_bytes = min(8 << 20, vmem_cap // 16)

    x = x_nchw.reshape(N, C, HW)                    # free reshape, no dtype cast

    # Tiny parameters in f32, pre-transposed for (rows, C) @ (C, C_int).
    wd = w_down.reshape(C_int, C).T.astype(jnp.float32)    # (C, C_int)
    wu = w_up.reshape(C, C_int).T.astype(jnp.float32)      # (C_int, C)
    bd = b_down.reshape(1, C_int).astype(jnp.float32)
    bu = b_up.reshape(1, C).astype(jnp.float32)
    param_bytes = 4 * (wd.size + wu.size + bd.size + bu.size)

    sample_bytes = C * HW * itemsize

    use_fused = sample_bytes <= fused_block_bytes
    thw = None
    if not use_fused:
        thw = _choose_stream_tile(HW, C, itemsize, stream_block_bytes)
        if thw is None or thw >= HW:
            # TODO(synk): tile over C (or pad HW) for pathological shapes
            # (huge C with tiny HW); fall back to the one-shot path instead of
            # an HW tiling we cannot express lane-densely.
            use_fused = True

    if use_fused:
        # ---------------- one-shot fused path ----------------
        nb = _choose_batch_pack(N, sample_bytes, fused_block_bytes)
        block_bytes = nb * sample_bytes
        vmem_limit = int(min(vmem_cap * 0.9,
                             max(4 * block_bytes + 2 * param_bytes + (2 << 20),
                                 16 << 20)))
        kernel = functools.partial(_se_fused_kernel, inv_hw=1.0 / HW)
        out = pl.pallas_call(
            kernel,
            out_shape=jax.ShapeDtypeStruct((N, C, HW), dtype),
            grid_spec=pltpu.PrefetchScalarGridSpec(
                num_scalar_prefetch=0,
                grid=(N // nb,),
                in_specs=[
                    pl.BlockSpec((nb, C, HW), lambda n: (n, 0, 0)),   # x
                    pl.BlockSpec((C, C_int), lambda n: (0, 0)),       # wd
                    pl.BlockSpec((1, C_int), lambda n: (0, 0)),       # bd
                    pl.BlockSpec((C_int, C), lambda n: (0, 0)),       # wu
                    pl.BlockSpec((1, C), lambda n: (0, 0)),           # bu
                ],
                out_specs=pl.BlockSpec((nb, C, HW), lambda n: (n, 0, 0)),
            ),
            compiler_params=pltpu.CompilerParams(
                dimension_semantics=("parallel",),
                vmem_limit_bytes=vmem_limit),
        )(x, wd, bd, wu, bu)
        return out.reshape(N, C, H, W)

    # ---------------- two-pass streaming path ----------------
    n_hw = pl.cdiv(HW, thw)
    tile_bytes = C * thw * itemsize

    # Pass 1: per-sample pooled means, shape (N, 1, C) f32.
    pool_kernel = functools.partial(_pool_kernel, hw=HW, thw=thw)
    vmem_limit1 = int(min(vmem_cap * 0.9,
                          max(2 * tile_bytes + C * 128 * 4 + (2 << 20),
                              16 << 20)))
    pooled = pl.pallas_call(
        pool_kernel,
        out_shape=jax.ShapeDtypeStruct((N, 1, C), jnp.float32),
        grid_spec=pltpu.PrefetchScalarGridSpec(
            num_scalar_prefetch=0,
            grid=(N, n_hw),
            in_specs=[pl.BlockSpec((1, C, thw), lambda n, h: (n, 0, h))],
            out_specs=pl.BlockSpec((1, 1, C), lambda n, h: (n, 0, 0)),
            scratch_shapes=[pltpu.VMEM((C, 128), jnp.float32)],
        ),
        compiler_params=pltpu.CompilerParams(
            dimension_semantics=("parallel", "arbitrary"),
            vmem_limit_bytes=vmem_limit1),
    )(x)

    # Excitation MLP batched over all N samples (tiny, fully resident).
    scales = pl.pallas_call(
        _excite_kernel,
        out_shape=jax.ShapeDtypeStruct((N, C), jnp.float32),
    )(pooled.reshape(N, C), wd, bd, wu, bu)
    scales3 = scales.reshape(N, C, 1)

    # Pass 2: streaming elementwise scale, both grid axes parallel.
    # TODO(synk): when the caller can donate x, add input_output_aliases={0: 0}
    # to drop the extra full-tensor HBM allocation around the custom call.
    vmem_limit2 = int(min(vmem_cap * 0.9,
                          max(4 * tile_bytes + (2 << 20), 16 << 20)))
    out = pl.pallas_call(
        _scale_kernel,
        out_shape=jax.ShapeDtypeStruct((N, C, HW), dtype),
        grid_spec=pltpu.PrefetchScalarGridSpec(
            num_scalar_prefetch=0,
            grid=(N, n_hw),
            in_specs=[
                pl.BlockSpec((1, C, thw), lambda n, h: (n, 0, h)),    # x
                pl.BlockSpec((1, C, 1), lambda n, h: (n, 0, 0)),      # scale
            ],
            out_specs=pl.BlockSpec((1, C, thw), lambda n, h: (n, 0, h)),
        ),
        compiler_params=pltpu.CompilerParams(
            dimension_semantics=("parallel", "parallel"),
            vmem_limit_bytes=vmem_limit2),
    )(x, scales3)
    return out.reshape(N, C, H, W)


# ---------------------------------------------------------------------------
# Pure-JAX reference (matches PyTorch SEBlock forward; compute in f32,
# output in the input dtype).
# ---------------------------------------------------------------------------
def se_block_ref(x, w_down, b_down, w_up, b_up):
    xf = x.astype(jnp.float32)
    pooled = jnp.mean(xf, axis=(2, 3))                            # (N, C)
    h = jnp.maximum(pooled @ w_down.astype(jnp.float32).T
                    + b_down.astype(jnp.float32), 0.0)            # (N, C_int)
    s = jax.nn.sigmoid(h @ w_up.astype(jnp.float32).T
                       + b_up.astype(jnp.float32))                # (N, C)
    return (xf * s[:, :, None, None]).astype(x.dtype)


if __name__ == "__main__":
    N, C, H, W = 2, 4, 16, 16
    C_INT = 2

    key = jax.random.PRNGKey(0)
    kx, kwd, kbd, kwu, kbu, kx2 = jax.random.split(key, 6)

    x = jax.random.normal(kx, (N, C, H, W), dtype=jnp.float32)
    # Conv2d 1x1 weights squeezed to 2-D, plus biases.
    w_down = jax.random.normal(kwd, (C_INT, C), dtype=jnp.float32) * 0.5
    b_down = jax.random.normal(kbd, (C_INT,), dtype=jnp.float32) * 0.1
    w_up = jax.random.normal(kwu, (C, C_INT), dtype=jnp.float32) * 0.5
    b_up = jax.random.normal(kbu, (C,), dtype=jnp.float32) * 0.1

    ref = se_block_ref(x, w_down, b_down, w_up, b_up)

    # 1) fused one-shot path (default, generation-aware budget).
    out = jax.block_until_ready(se_block(x, w_down, b_down, w_up, b_up))
    assert out.dtype == x.dtype
    assert jnp.allclose(out, ref, atol=1e-5, rtol=1e-5), "fused path mismatch"

    # 2) two-pass streaming path (force tiling with tiny budgets; HW=256).
    out_tiled = jax.block_until_ready(
        se_block(x, w_down, b_down, w_up, b_up,
                 fused_block_bytes=2048, stream_block_bytes=2048))
    assert jnp.allclose(out_tiled, ref, atol=1e-5, rtol=1e-5), \
        "tiled path mismatch"

    # 3) ragged HW (16*18 = 288 = 2*128 + 32): masked last tile in both passes.
    x3 = jax.random.normal(kx2, (N, C, 16, 18), dtype=jnp.float32)
    ref3 = se_block_ref(x3, w_down, b_down, w_up, b_up)
    out3 = jax.block_until_ready(
        se_block(x3, w_down, b_down, w_up, b_up,
                 fused_block_bytes=2048, stream_block_bytes=2048))
    assert jnp.allclose(out3, ref3, atol=1e-5, rtol=1e-5), \
        "ragged tiled path mismatch"

    # 4) bf16 activations stay bf16 end-to-end (no wrapper-level upcast).
    x_bf = x.astype(jnp.bfloat16)
    out_bf = jax.block_until_ready(se_block(x_bf, w_down, b_down, w_up, b_up))
    ref_bf = se_block_ref(x_bf, w_down, b_down, w_up, b_up)
    assert out_bf.dtype == jnp.bfloat16
    assert jnp.allclose(out_bf.astype(jnp.float32),
                        ref_bf.astype(jnp.float32),
                        atol=2e-2, rtol=2e-2), "bf16 path mismatch"

    print("KERNEL_OK")
</pallas_src>

<mosaic_0001>
module attributes {stable_mosaic.version = 11 : i64} {
  func.func @_se_fused_kernel(%arg0: i32, %arg1: memref<1x4x256xf32, #tpu.memory_space<vmem>>, %arg2: memref<4x2xf32, #tpu.memory_space<vmem>>, %arg3: memref<1x2xf32, #tpu.memory_space<vmem>>, %arg4: memref<2x4xf32, #tpu.memory_space<vmem>>, %arg5: memref<1x4xf32, #tpu.memory_space<vmem>>, %arg6: memref<1x4x256xf32, #tpu.memory_space<vmem>>) attributes {dimension_semantics = [#tpu.dimension_semantics<parallel>], iteration_bounds = array<i64: 2>, scalar_prefetch = 0 : i64, scratch_operands = 0 : i64, tpu.core_type = #tpu.core_type<tc>, window_params = [{transform_indices = @transform_0, window_bounds = array<i64: 1, 4, 256>}, {pipeline_mode = #tpu.pipeline_mode<synchronous>, transform_indices = @transform_1, window_bounds = array<i64: 4, 2>}, {pipeline_mode = #tpu.pipeline_mode<synchronous>, transform_indices = @transform_2, window_bounds = array<i64: 1, 2>}, {pipeline_mode = #tpu.pipeline_mode<synchronous>, transform_indices = @transform_3, window_bounds = array<i64: 2, 4>}, {pipeline_mode = #tpu.pipeline_mode<synchronous>, transform_indices = @transform_4, window_bounds = array<i64: 1, 4>}, {transform_indices = @transform_5, window_bounds = array<i64: 1, 4, 256>}]} {
    %cst = arith.constant 0.000000e+00 : f32
    %0 = vector.broadcast %cst : f32 to vector<1x4xf32>
    %cst_0 = arith.constant 0.000000e+00 : f32
    %1 = vector.broadcast %cst_0 : f32 to vector<1x4x128xf32>
    %c0_i32 = arith.constant 0 : i32
    %c128_i32 = arith.constant 128 : i32
    %2 = arith.muli %c0_i32, %c128_i32 : i32
    %3 = tpu.assume_multiple %2, 128 : i32
    %c0 = arith.constant 0 : index
    %c0_1 = arith.constant 0 : index
    %4 = arith.index_cast %3 : i32 to index
    %5 = vector.load %arg1[%c0, %c0_1, %4] : memref<1x4x256xf32, #tpu.memory_space<vmem>>, vector<1x4x128xf32>
    %6 = arith.addf %1, %5 : vector<1x4x128xf32>
    %c1_i32 = arith.constant 1 : i32
    %c128_i32_2 = arith.constant 128 : i32
    %7 = arith.muli %c1_i32, %c128_i32_2 : i32
    %8 = tpu.assume_multiple %7, 128 : i32
    %c0_3 = arith.constant 0 : index
    %c0_4 = arith.constant 0 : index
    %9 = arith.index_cast %8 : i32 to index
    %10 = vector.load %arg1[%c0_3, %c0_4, %9] : memref<1x4x256xf32, #tpu.memory_space<vmem>>, vector<1x4x128xf32>
    %11 = arith.addf %6, %10 : vector<1x4x128xf32>
    %c2_i32 = arith.constant 2 : i32
    %cst_5 = arith.constant dense<0.000000e+00> : vector<1x4xf32>
    %12 = vector.multi_reduction <add>, %11, %cst_5 [2] : vector<1x4x128xf32> to vector<1x4xf32>
    %13 = arith.addf %0, %12 : vector<1x4xf32>
    %cst_6 = arith.constant 3.906250e-03 : f32
    %14 = vector.broadcast %cst_6 : f32 to vector<1x4xf32>
    %15 = arith.mulf %13, %14 : vector<1x4xf32>
    %c0_7 = arith.constant 0 : index
    %c0_8 = arith.constant 0 : index
    %16 = vector.load %arg2[%c0_7, %c0_8] : memref<4x2xf32, #tpu.memory_space<vmem>>, vector<4x2xf32>
    %cst_9 = arith.constant dense<0.000000e+00> : vector<1x2xf32>
    %17 = tpu.matmul %15, %16, %cst_9 {dimension_numbers = #tpu.dot_dimension_numbers<[1], [0], [0], [1], [0, 0, 1, 1], [], []>} : vector<1x4xf32>, vector<4x2xf32>, vector<1x2xf32> -> vector<1x2xf32>
    %c0_10 = arith.constant 0 : index
    %c0_11 = arith.constant 0 : index
    %18 = vector.load %arg3[%c0_10, %c0_11] : memref<1x2xf32, #tpu.memory_space<vmem>>, vector<1x2xf32>
    %19 = arith.addf %17, %18 : vector<1x2xf32>
    %cst_12 = arith.constant 0.000000e+00 : f32
    %20 = vector.broadcast %cst_12 : f32 to vector<1x2xf32>
    %21 = arith.maximumf %19, %20 : vector<1x2xf32>
    %c0_13 = arith.constant 0 : index
    %c0_14 = arith.constant 0 : index
    %22 = vector.load %arg4[%c0_13, %c0_14] : memref<2x4xf32, #tpu.memory_space<vmem>>, vector<2x4xf32>
    %cst_15 = arith.constant dense<0.000000e+00> : vector<1x4xf32>
    %23 = tpu.matmul %21, %22, %cst_15 {dimension_numbers = #tpu.dot_dimension_numbers<[1], [0], [0], [1], [0, 0, 1, 1], [], []>} : vector<1x2xf32>, vector<2x4xf32>, vector<1x4xf32> -> vector<1x4xf32>
    %c0_16 = arith.constant 0 : index
    %c0_17 = arith.constant 0 : index
    %24 = vector.load %arg5[%c0_16, %c0_17] : memref<1x4xf32, #tpu.memory_space<vmem>>, vector<1x4xf32>
    %25 = arith.addf %23, %24 : vector<1x4xf32>
    %26 = arith.negf %25 : vector<1x4xf32>
    %27 = math.exp %26 : vector<1x4xf32>
    %cst_18 = arith.constant 1.000000e+00 : f32
    %28 = vector.broadcast %cst_18 : f32 to vector<1x4xf32>
    %29 = arith.addf %28, %27 : vector<1x4xf32>
    %30 = arith.divf %28, %29 : vector<1x4xf32>
    %c0_19 = arith.constant 0 : index
    %c0_20 = arith.constant 0 : index
    %c0_21 = arith.constant 0 : index
    %31 = vector.load %arg1[%c0_19, %c0_20, %c0_21] : memref<1x4x256xf32, #tpu.memory_space<vmem>>, vector<1x4x256xf32>
    %32 = vector.shape_cast %30 : vector<1x4xf32> to vector<1x4x1xf32>
    %33 = vector.broadcast %32 : vector<1x4x1xf32> to vector<1x4x256xf32>
    %34 = arith.mulf %31, %33 : vector<1x4x256xf32>
    %c0_22 = arith.constant 0 : index
    %c0_23 = arith.constant 0 : index
    %c0_24 = arith.constant 0 : index
    %35 = vector.load %arg6[%c0_22, %c0_23, %c0_24] : memref<1x4x256xf32, #tpu.memory_space<vmem>>, vector<1x4x256xf32>
    tpu.vector_store %arg6[%c0_22, %c0_23, %c0_24], %34 {strides = array<i32>} : memref<1x4x256xf32, #tpu.memory_space<vmem>>, vector<1x4x256xf32>,
    return
  }
  func.func @transform_0(%arg0: i32) -> (i32, i32, i32) {
    %c0_i32 = arith.constant 0 : i32
    %c0_i32_0 = arith.constant 0 : i32
    %c0_i32_1 = arith.constant 0 : i32
    return %arg0, %c0_i32, %c0_i32_0 : i32, i32, i32
  }
  func.func @transform_1(%arg0: i32) -> (i32, i32) {
    %c0_i32 = arith.constant 0 : i32
    %c0_i32_0 = arith.constant 0 : i32
    %c0_i32_1 = arith.constant 0 : i32
    return %c0_i32, %c0_i32_0 : i32, i32
  }
  func.func @transform_2(%arg0: i32) -> (i32, i32) {
    %c0_i32 = arith.constant 0 : i32
    %c0_i32_0 = arith.constant 0 : i32
    %c0_i32_1 = arith.constant 0 : i32
    return %c0_i32, %c0_i32_0 : i32, i32
  }
  func.func @transform_3(%arg0: i32) -> (i32, i32) {
    %c0_i32 = arith.constant 0 : i32
    %c0_i32_0 = arith.constant 0 : i32
    %c0_i32_1 = arith.constant 0 : i32
    return %c0_i32, %c0_i32_0 : i32, i32
  }
  func.func @transform_4(%arg0: i32) -> (i32, i32) {
    %c0_i32 = arith.constant 0 : i32
    %c0_i32_0 = arith.constant 0 : i32
    %c0_i32_1 = arith.constant 0 : i32
    return %c0_i32, %c0_i32_0 : i32, i32
  }
  func.func @transform_5(%arg0: i32) -> (i32, i32, i32) {
    %c0_i32 = arith.constant 0 : i32
    %c0_i32_0 = arith.constant 0 : i32
    %c0_i32_1 = arith.constant 0 : i32
    return %arg0, %c0_i32, %c0_i32_0 : i32, i32, i32
  }
}

</mosaic_0001>

<bundles_post_ra>
// kernel: tpu_custom_call.1
= control target key start
LH: loop header
LB: loop body
LE: loop exit
PB: predicated region body
PF: predicated region fallthrough
CT: control target
= control target key end

     0   :  { %10 = vsyncpa [#allocation3], 0  ;;  %s790_s0 = inlined_call_operand.hbm [shape: f32[2,4,256], index: 0, kind: input, shape index: {}]   ;;  %s791_s1 = inlined_call_operand.vmem [shape: f32[4,2], index: 1, kind: input, shape index: {}]   ;;  %s792_s2 = inlined_call_operand.vmem [shape: f32[1,2], index: 2, kind: input, shape index: {}]   ;;  %s793_s3 = inlined_call_operand.vmem [shape: f32[2,4], index: 3, kind: input, shape index: {}]   ;;  %s794_s4 = inlined_call_operand.vmem [shape: f32[1,4], index: 4, kind: input, shape index: {}]   ;;  %s795_s5 = inlined_call_operand.hbm [shape: f32[2,4,256], index: 5, kind: output, shape index: {}]  }
   0x1   :  { %12 = vsyncpa [#allocation3 + $0x1], 0 }
   0x2   :  { %13 = vsyncpa [#allocation4], 0 }
   0x3   :  { %15 = vsyncpa [#allocation4 + $0x1], 0  ;;  %s642_s18 = smov 0   ;;  %s644_s19 = smov 0  }
   0x4   :  { %s646_s20 = smov 0   ;;  %s648_s21 = smov 0  }
   0x5 LB: > { %s663_s22 = sadd.s32 4294967295, %s609_s21   ;;  %s439_s23 = sadd.s32 4294967294, %s609_s21   ;;  %s609_s21 = sphi %s648_s21, %s805_s21   ;;  %s605_s20 = sphi %s646_s20, %s804_s20   ;;  %s601_s19 = sphi %s644_s19, %s803_s19   ;;  %s597_s18 = sphi %s642_s18, %s802_s18  }
   0x6   : > { %s667_s24 = sadd.s32 1, %s609_s21   ;;  %s28_s25 = sadd.s32 1, %s605_s20 }
   0x7   : > { %s25_s26 = ssub.s32 %s609_s21, %s667_s24  ;;  %p35_p0 = scmp.ne.s32.totalorder %s605_s20, %s601_s19 }
   0x8   : > { %p26_p1 = scmp.eq.s32.totalorder %s25_s26, 0  ;;  %p36_p2 = scmp.eq.s32.totalorder %s609_s21, 0 }
   0x9   : > { %p41_p3 = scmp.ne.s32.totalorder %s601_s19, %s597_s18  ;;  %p42_p4 = scmp.eq.s32.totalorder %s663_s22, 0 }
   0xa   : > { %s679_s27 = scalar_select %p26_p1, %s605_s20, %s28_s25  }
   0xb   : > { %p681_p5 = por %p36_p2, %p35_p0  ;;  %p685_p6 = por %p42_p4, %p41_p3 }
   0xc   : > { %p149_p7 = scmp.eq.s32.totalorder %s663_s22, 1  ;;  %p155_p8 = scmp.eq.s32.totalorder %s439_s23, 1 }
   0xd   : > { %p473_p10 = scmp.lt.s32.totalorder %s609_s21, 2  ;;  %s187_s7 = sand.u32 1, %s605_s20  }
   0xe   : > { %p692_p11 = por %p149_p7, %p35_p0  ;;  %p696_p12 = por %p155_p8, %p41_p3 }
   0xf   : > { %s459_s8 = sshll.u32 %s609_s21, 3  ;;  %s442_s9 = sshll.u32 %s187_s7, 3 }
  0x10   : > { %s196_s12 = scalar_lea.hbm %s790_s0, %s459_s8  ;;  %s191_s14 = scalar_lea.vmem [#allocation2], %s442_s9 }
  0x11   : > { %s198_s13 = sshll.u32 %s196_s12, 4  ;;  %s200_s15 = sshll.u32 %s191_s14, 4  ;;  %s199_s13 = int_to_ptr.hbm [resolvable:$true] %s198_s13  ;;  %s201_s15 = int_to_ptr.vmem [resolvable:$true] %s200_s15 }
  0x12   : > { %p707_p13 = pnand %p473_p10, %p681_p5  ;;  %p445_p0 = scmp.ge.s32.totalorder %s609_s21, 1 }
  0x13   : > { %p205_p1 = scmp.lt.s32.totalorder %s609_s21, 3  ;;  %s188_s17 = scalar_lea.sflag [#allocation3], %s187_s7 }
  0x14   : > { %s513_s23 = sshra.s32 %s199_s13, 4  ;;  %p517_p3 = pneg %p707_p13  ;;  %s514_s23 = int_to_ptr.hbm [resolvable:$true] %s513_s23 }
  0x15   : > { %s515_s25 = scalar_lea.hbm %s514_s23, 8  ;;  %s520_s28 = scalar_lea.hbm %s790_s0, 16 }
  0x16   : > { %p516_p2 = scmp.ne.s32.totalorder %s514_s23, %s515_s25  ;;  %p521_p5 = scmp.lt.s32.totalorder %s514_s23, %s790_s0 }
  0x17   : > { %p522_p8 = scmp.lt.s32.totalorder %s520_s28, %s515_s25 }
  0x18   : > { %p518_p4 = pnand %p517_p3, %p516_p2 }
  0x19   : > { %p523_p10 = por %p522_p8, %p521_p5 }
  0x1a   : > { %p519_p7 = pneg %p518_p4 }
  0x1c   : > { %p524_p9 = pnand %p523_p10, %p519_p7 }
  0x1e   : > { %527 = shalt.err (!%p524_p9)
}
  0x1f   : > { %468 = dma.hbm_to_vmem [thread:$0]  (!%p707_p13), %s199_s13, 128, %s201_s15, %s188_s17  }
  0x20   : > { %p206_p2 = pnand %p445_p0, %p205_p1 }
  0x21   : > { %s728_s7 = sand.u32 (!%p206_p2), 1, %s601_s19  }
  0x22   : > { %209 = sbr.rel (%p206_p2) target bundleno = 574 (0x23e), region = 40  ;;  %s446_s11 = sshll.u32 (!%p206_p2), %s728_s7, 3 }
  0x23   : > { %s212_s12 = scalar_lea.sflag (!%p206_p2), [#allocation3], %s728_s7  ;;  %s734_s14 = scalar_lea.vmem (!%p206_p2), [#allocation2], %s446_s11 }
  0x27   : > { %588 = dma.done.wait (%p685_p6), %s212_s12, 128  }
  0x28   : > { %590 = vsyncadd (%p685_p6), %s212_s12, 4294967168  ;;  %v243_v0 = vld [vmem:[%s734_s14] sm:$0xf]  ;;  %v448_v1 = vld [vmem:[%s734_s14 + $0x4] sm:$0xf]  ;;  %vm248_vm0 = vcmask 1043456   ;;  %v257_v5 = vlaneseq }
  0x29   : > { %v247_v2 = vadd.f32 %v448_v1, %v243_v0  ;;  %v254_v4 = vld [vmem:[%s791_s1] sm:$0xf]  ;;  %vm260_vm1 = vcmask 31744   ;;  %vm293_vm2 = vcmask 1041408   ;;  %vm289_vm3 = vcmask 15360   ;;  %s460_s8 = sshll.u32 %s663_s22, 3 }
  0x2a   : > { %449 = vmatpush.msk.msra.mxu0 %vm248_vm0, %v254_v4  ;;  %v258_v6 = vand.u32 127, %v257_v5  ;;  %v287_v10 = vld [vmem:[%s793_s3] sm:$0x3]  ;;  %v339_v15 = vshrl.u32 %v257_v5, 7  ;;  %v611_v33 = vmov 839922192   ;;  %s364_s10 = scalar_lea.hbm %s795_s5, %s460_s8 }
  0x2b   : > { %v249_v3 = vsel %vm248_vm0, %v247_v2, 0.0  ;;  %451 = vmatpush.msk.msra.mxu1 %vm293_vm2, %v287_v10  ;;  %v255_v11 = vld [vmem:[%s792_s2] sm:$0x1]  ;;  %v346_v34 = vunpack.c.l.s4 %v611_v33  ;;  %s242_s12 = scalar_lea.vmem [#allocation5], %s446_s11  ;;  %s368_s15 = sshll.u32 %s364_s10, 4  ;;  %s369_s15 = int_to_ptr.hbm [resolvable:$true] %s368_s15 }
  0x2c   : > { %250 = vadd.xlane.f32.xlu0 %v249_v3  ;;  %v288_v16 = vld [vmem:[%s794_s4] sm:$0x1]  ;;  %s366_s13 = sshll.u32 %s242_s12, 4  ;;  %s353_s29 = scalar_lea.sflag [#allocation4], %s728_s7  ;;  %s367_s13 = int_to_ptr.vmem [resolvable:$true] %s366_s13 }
  0x2d   : > { %508 = vset.pattern.permute.xlu0 %v339_v15  ;;  %v347_v35 = vunpack.c.0.s8 %v346_v34  ;;  %v336_v36 = vld [vmem:[%s734_s14] sm:$0xff]  ;;  %s557_s16 = sshra.s32 %s369_s15, 4  ;;  %s563_s23 = scalar_lea.hbm %s795_s5, 16  ;;  %s558_s16 = int_to_ptr.hbm [resolvable:$true] %s557_s16 }
  0x2e   : > { %s559_s22 = scalar_lea.hbm %s558_s16, 8  ;;  %p564_p0 = scmp.lt.s32.totalorder %s558_s16, %s795_s5 }
  0x2f   : > { %p560_p6 = scmp.ne.s32.totalorder %s558_s16, %s559_s22  ;;  %p565_p1 = scmp.lt.s32.totalorder %s563_s23, %s559_s22 }
  0x31   : > { %p561_p9 = pnand %p560_p6, %p692_p11  ;;  %p566_p3 = por %p565_p1, %p564_p0 }
  0x33   : > { %p562_p13 = pneg %p561_p9 }
  0x35   : > { %p567_p4 = pnand %p566_p3, %p562_p13 }
  0x9f   : > { %v251_v7 = vpop.xlane.xlu0 %250 }
  0xa0   : > { %v253_v8 = vmul.f32 0.00390625, %v251_v7 }
  0xa2   : > { %v259_v9 = vperm.slane %v253_v8, %v258_v6 }
  0xa4   : > { %450 = vmatmul.msk.f32.vlgmr.msra.gmra.mxu0 %vm260_vm1, %v259_v9 }
 0x121   : > { %v283_v12 = vpop.f32.mrf.mxu0 }
 0x122   : > { %v284_v13 = vadd.f32 %v283_v12, %v255_v11 }
 0x124   : > { %v286_v14 = vmax.f32 %v284_v13, 0.0 }
 0x126   : > { %452 = vmatmul.msk.f32.vlgmr.msra.gmra.mxu1 %vm289_vm3, %v286_v14 }
 0x1a3   : > { %v314_v17 = vpop.f32.mrf.mxu1 }
 0x1a4   : > { %v315_v18 = vadd.f32 %v314_v17, %v288_v16 }
 0x1a6   : > { %v453_v19 = vmul.f32 -1.442695, %v315_v18 }
 0x1a8   : > { %509 = vpow2.f32 %v453_v19 }
 0x1ae   : > { %v510_v20 = vpop.eup %509 }
 0x1af   : > { %v320_v21 = vadd.f32 1.0, %v510_v20 }
 0x1b1   : > { %511 = vrcp.f32 %v320_v21  ;;  %v332_v25 = vand.u32 2147483648, %v320_v21  ;;  %v330_v27 = vand.u32 2147483647, %v320_v21  ;;  %vm326_vm5 = vweird.f32 %v320_v21 }
 0x1b3   : > { %v333_v29 = vor.u32 1.1754944e-38, %v332_v25  ;;  %vm331_vm7 = vcmp.eq.f32.partialorder %v330_v27, 8.507059e+37 }
 0x1b7   : > { %v512_v22 = vpop.eup %511 }
 0x1b8   : > { %v322_v23 = vmul.f32 %v512_v22, %v320_v21  ;;  %vm327_vm4 = vweird.f32 %v512_v22 }
 0x1b9   : > { %vm328_vm6 = vmor %vm326_vm5, %vm327_vm4 }
 0x1ba   : > { %v323_v24 = vsub.f32 1.0, %v322_v23 }
 0x1bc   : > { %v324_v26 = vmul.f32 %v512_v22, %v323_v24 }
 0x1be   : > { %v325_v28 = vadd.f32 %v512_v22, %v324_v26 }
 0x1c0   : > { %v329_v30 = vsel %vm328_vm6, %v512_v22, %v325_v28 }
 0x1c1   : > { %v334_v31 = vsel %vm331_vm7, %v333_v29, %v329_v30 }
 0x1c2   : > { %v337_v32 = vperm.slane %v334_v31, 0 }
 0x1c4   : > { %342 = vperm.xlu0 %508, %v337_v32  }
 0x236   : > { %v343_v37 = vpop.permute.xlu0 %342 }
 0x237   : > { %v348_v38 = vperm.slane %v343_v37, %v347_v35 }
 0x239   : > { %v350_v39 = vmul.f32 %v348_v38, %v336_v36 }
 0x23b   : > { %351 = vst [vmem:[%s242_s12] sm:$0xff] %v350_v39 }
 0x23c   : > { %570 = shalt.err (!%p567_p4)
}
 0x23d   : > { %463 = dma.vmem_to_hbm [thread:$0]  (%p692_p11), %s367_s13, 128, %s369_s15, %s353_s29  }
 0x23e PF: > { %s380_s7 = sand.u32 1, %s597_s18   ;;  %p801_p7 = scmp.ge.s32.totalorder %s609_s21, 2 }
 0x23f   : > { %s381_s26 = scalar_lea.sflag [#allocation4], %s380_s7 }
 0x240   : > { %p470_p5 = pnand %p801_p7, %p696_p12 }
 0x242   : > { %p471_p8 = pneg %p470_p5 }
 0x244   : > { %592 = dma.done.wait (%p471_p8), %s381_s26, 128  }
 0x245   : > { %594 = vsyncadd (%p471_p8), %s381_s26, 4294967168  ;;  %p18_p10 = scmp.ge.s32.totalorder %s667_s24, 4   ;;  %s802_s18 = smov %s601_s19 }
 0x246   : > { %s803_s19 = smov %s605_s20  ;;  %s804_s20 = smov %s679_s27 }
 0x247   : > { %s805_s21 = smov %s667_s24  ;;  %20 = sbr.rel (!%p18_p10) target bundleno = 5 (0x5), region = 86 }
 0x24c   :  { %387 = vsyncpa [#allocation3], 1 }
 0x24d   :  { %389 = vsyncpa [#allocation3 + $0x1], 1 }
 0x24e   :  { %390 = vsyncpa [#allocation4], 1 }
 0x24f   :  { %392 = vsyncpa [#allocation4 + $0x1], 1 }

</bundles_post_ra>
